<compile_context>
chip_gen: v6e
topology: v6e:2x2x1
jax: 0.10.0
libtpu: 0.0.40
codegen_flags: <defaults>
</compile_context>

<pallas_src>
import jax
import jax.numpy as jnp
from jax.experimental import pallas as pl
from jax.experimental.pallas import tpu as pltpu

LANE = 128


def _round_up(x, m):
    return ((x + m - 1) // m) * m


def _pad_axis(a, axis, target):
    pad = target - a.shape[axis]
    if pad <= 0:
        return a
    widths = [(0, 0)] * a.ndim
    widths[axis] = (0, pad)
    return jnp.pad(a, widths)


def _pick_tm(B, row_align, tm_max=2048, min_tiles=2):
    """Pick a batch tile: big (few grid steps), 16-row aligned, prefer an
    exact divisor of B (no batch padding) and an even step count (v7x)."""
    B = int(B)
    n_tiles = max(min_tiles, -(-B // tm_max))
    if n_tiles % 2:
        n_tiles += 1                                  # even step count
    tm_target = _round_up(max(1, -(-B // n_tiles)), row_align)
    tm_target = min(tm_target, _round_up(tm_max, row_align))
    for require_even in (True, False):                # exact divisor first
        tm = tm_target
        while tm >= row_align:
            if B % tm == 0:
                n = B // tm
                if n >= min_tiles and (not require_even or n % 2 == 0):
                    return tm
            tm -= row_align
    return tm_target                                  # fall back: pad batch


# ---------------------------------------------------------------------------
# Fused decoder MLP kernel
# ---------------------------------------------------------------------------
def _make_decoder_kernel(n_layers, conditional, have_scene_flow, num_labels,
                         sf_dim, compute_dtype):
    def kernel(*refs):
        pos = 0
        z_ref = refs[pos]; pos += 1
        c_ref = sf_ref = None
        if conditional:
            c_ref = refs[pos]; pos += 1
        if have_scene_flow:
            sf_ref = refs[pos]; pos += 1
        o_ref = refs[-1]

        # ---- layer 0: fused concat via split matmuls + in-kernel one-hot ----
        h = jnp.dot(z_ref[...].astype(compute_dtype), refs[pos][...],
                    preferred_element_type=jnp.float32)
        pos += 1
        if conditional:
            tm = z_ref.shape[0]
            # one-hot as an iota compare (out-of-range label -> all-zero row)
            onehot = (c_ref[...] == jax.lax.broadcasted_iota(
                jnp.int32, (tm, num_labels), 1)).astype(compute_dtype)
            h = h + jnp.dot(onehot, refs[pos][...],
                            preferred_element_type=jnp.float32)
            pos += 1
        if have_scene_flow:
            # K=3 contraction on the VPU (broadcast FMAs), not the MXU.
            sf = sf_ref[...].astype(jnp.float32)
            w_sf = refs[pos][...]                      # (sf_dim, D0) f32
            pos += 1
            for j in range(sf_dim):
                h = h + sf[:, j:j + 1] * w_sf[j:j + 1, :]
        h = h + refs[pos][...]                         # bias b0 (1, D0) f32
        pos += 1
        h = jnp.maximum(h, 0.0) if n_layers > 1 else jax.nn.sigmoid(h)

        # ---- layers 1 .. n-1 ----
        for li in range(1, n_layers):
            w = refs[pos][...]; pos += 1
            b = refs[pos][...]; pos += 1
            h = jnp.dot(h.astype(compute_dtype), w,
                        preferred_element_type=jnp.float32) + b
            h = jnp.maximum(h, 0.0) if li + 1 < n_layers else jax.nn.sigmoid(h)

        o_ref[...] = h.astype(o_ref.dtype)

    return kernel


# ---------------------------------------------------------------------------
# Decoder forward (wrapper: padding / splitting / pallas_call plumbing)
# ---------------------------------------------------------------------------
def decoder_forward(params, z, c=None, scene_flow=None, *, conditional,
                    num_labels, have_scene_flow, block_rows=None,
                    compute_dtype=jnp.bfloat16, out_dtype=jnp.bfloat16):
    weights, biases = params            # f32 master copies, unpadded, unsplit
    n_layers = len(weights)
    B, latent = z.shape
    out_dim = weights[-1].shape[1]
    sf_dim = scene_flow.shape[1] if have_scene_flow else 0

    # ---- pad hidden/output feature dims to 128-lane multiples (exact) ----
    padded_out = [_round_up(w.shape[1], LANE) for w in weights]

    # layer 0: split input-feature rows into (z | onehot(c) | scene_flow)
    w0 = weights[0]
    splits = [latent]
    if conditional:
        splits.append(num_labels)
    if have_scene_flow:
        splits.append(sf_dim)
    assert sum(splits) == w0.shape[0], "layer-0 weight rows must match inputs"

    w0_parts, start = [], 0
    for idx, s in enumerate(splits):
        part = _pad_axis(w0[start:start + s, :], 1, padded_out[0])
        is_sf_part = have_scene_flow and idx == len(splits) - 1
        # sf part stays f32 (consumed on the VPU); MXU parts go bf16
        w0_parts.append(part.astype(jnp.float32 if is_sf_part else compute_dtype))
        start += s

    layer_ws = [w0_parts]
    for i in range(1, n_layers):
        w = _pad_axis(_pad_axis(weights[i], 0, padded_out[i - 1]), 1, padded_out[i])
        layer_ws.append([w.astype(compute_dtype)])

    layer_bs = [
        _pad_axis(b, 0, padded_out[i]).reshape(1, -1).astype(jnp.float32)
        for i, b in enumerate(biases)
    ]

    # ---- batch tiling (16-row alignment for bf16 sublane packing) ----
    row_align = 16 if jnp.dtype(compute_dtype) == jnp.dtype(jnp.bfloat16) else 8
    if block_rows is None:
        TM = _pick_tm(B, row_align)
    else:
        TM = _round_up(min(block_rows, B), row_align)
    B_pad = _round_up(B, TM)
    grid = (B_pad // TM,)

    args, in_specs = [], []

    args.append(_pad_axis(z, 0, B_pad))
    in_specs.append(pl.BlockSpec((TM, latent), lambda i: (i, 0)))

    if conditional:
        c2 = _pad_axis(c.reshape(B, 1).astype(jnp.int32), 0, B_pad)
        args.append(c2)
        in_specs.append(pl.BlockSpec((TM, 1), lambda i: (i, 0)))

    if have_scene_flow:
        args.append(_pad_axis(scene_flow, 0, B_pad))
        in_specs.append(pl.BlockSpec((TM, sf_dim), lambda i: (i, 0)))

    # weights / biases: constant index_map -> VMEM-resident across batch steps
    for li in range(n_layers):
        for w in layer_ws[li]:
            args.append(w)
            in_specs.append(pl.BlockSpec(w.shape, lambda i: (0, 0)))
        args.append(layer_bs[li])
        in_specs.append(pl.BlockSpec(layer_bs[li].shape, lambda i: (0, 0)))

    out_pad = padded_out[-1]
    kernel = _make_decoder_kernel(n_layers, conditional, have_scene_flow,
                                  num_labels, sf_dim, compute_dtype)

    # ---- advisory cost estimate (updated for bf16 output / new tiling) ----
    dims_in = [w0.shape[0]] + padded_out[:-1]
    flops = 2 * B_pad * sum(di * do for di, do in zip(dims_in, padded_out))
    out_itemsize = jnp.dtype(out_dtype).itemsize
    bytes_accessed = sum(int(a.size) * a.dtype.itemsize for a in args)
    bytes_accessed += B_pad * out_pad * out_itemsize
    cost = pl.CostEstimate(flops=int(flops),
                           transcendentals=int(B_pad * out_pad),
                           bytes_accessed=int(bytes_accessed))

    # ---- explicit VMEM budget: resident weights + double-buffered tiles ----
    weight_bytes = sum(int(w.size) * w.dtype.itemsize
                       for parts in layer_ws for w in parts)
    weight_bytes += sum(int(b.size) * 4 for b in layer_bs)
    row_bytes = latent * z.dtype.itemsize
    if conditional:
        row_bytes += 4
    if have_scene_flow:
        row_bytes += sf_dim * scene_flow.dtype.itemsize
    row_bytes += out_pad * out_itemsize
    stream_bytes = 2 * TM * row_bytes                        # double-buffered
    act_bytes = TM * max(padded_out) * (4 + 2)               # f32 acc + bf16 copy
    needed = 2 * (weight_bytes + stream_bytes) + act_bytes + (2 << 20)
    vmem_limit = int(min(64 << 20, max(needed, 16 << 20)))

    out = pl.pallas_call(
        kernel,
        out_shape=jax.ShapeDtypeStruct((B_pad, out_pad), out_dtype),
        grid=grid,
        in_specs=in_specs,
        out_specs=pl.BlockSpec((TM, out_pad), lambda i: (i, 0)),
        compiler_params=pltpu.CompilerParams(
            dimension_semantics=("parallel",),   # megacore on v7x
            vmem_limit_bytes=vmem_limit),
        cost_estimate=cost,
    )(*args)

    # NOTE: padded rows/cols of `out` are garbage/0.5 — always slice.
    return out[:B, :out_dim]


# ---------------------------------------------------------------------------
# Parameter init (matches nn.Linear default uniform init ranges)
# ---------------------------------------------------------------------------
def init_decoder_params(key, layer_sizes, latent_size, conditional, num_labels,
                        have_scene_flow):
    input_size = latent_size + (num_labels if conditional else 0)
    if have_scene_flow:
        input_size += 3
    sizes = [input_size] + list(layer_sizes)
    weights, biases = [], []
    for fan_in, fan_out in zip(sizes[:-1], sizes[1:]):
        key, kw, kb = jax.random.split(key, 3)
        bound = 1.0 / jnp.sqrt(fan_in)
        weights.append(jax.random.uniform(kw, (fan_in, fan_out), jnp.float32,
                                          -bound, bound))
        biases.append(jax.random.uniform(kb, (fan_out,), jnp.float32,
                                         -bound, bound))
    return weights, biases


# ---------------------------------------------------------------------------
if __name__ == "__main__":
    batch = 40                    # not 16-aligned -> exercises batch padding
    latent_size = 16
    num_labels = 8
    layer_sizes = [32, 64]        # last layer sigmoid, earlier ReLU
    conditional = True
    have_scene_flow = True

    key = jax.random.PRNGKey(0)
    kp, kz, kc, ks = jax.random.split(key, 4)

    params = init_decoder_params(kp, layer_sizes, latent_size, conditional,
                                 num_labels, have_scene_flow)

    z = jax.random.normal(kz, (batch, latent_size), dtype=jnp.float32)
    c = jax.random.randint(kc, (batch,), 0, num_labels, dtype=jnp.int32)
    scene_flow = jax.random.normal(ks, (batch, 3), dtype=jnp.float32)

    out = decoder_forward(params, z, c, scene_flow,
                          conditional=conditional,
                          num_labels=num_labels,
                          have_scene_flow=have_scene_flow)   # default tiling
    out = jax.block_until_ready(out)

    # pure-JAX f32 reference of the same MLP
    x_ref = jnp.concatenate(
        [z, jax.nn.one_hot(c, num_labels, dtype=jnp.float32), scene_flow], -1)
    h = x_ref
    ws, bs = params
    for i, (w, b) in enumerate(zip(ws, bs)):
        h = h @ w + b
        h = jnp.maximum(h, 0.0) if i + 1 < len(ws) else jax.nn.sigmoid(h)

    assert out.shape == (batch, layer_sizes[-1])
    # bf16 weights/activations/output (f32 accumulation) -> loosened tolerance
    assert jnp.allclose(out.astype(jnp.float32), h, atol=3e-2, rtol=3e-2), \
        float(jnp.max(jnp.abs(out.astype(jnp.float32) - h)))

    print("KERNEL_OK")
</pallas_src>

<mosaic_0001>
module attributes {stable_mosaic.version = 11 : i64} {
  func.func @kernel(%arg0: i32, %arg1: memref<32x16xf32, #tpu.memory_space<vmem>>, %arg2: memref<32x1xi32, #tpu.memory_space<vmem>>, %arg3: memref<32x3xf32, #tpu.memory_space<vmem>>, %arg4: memref<16x128xbf16, #tpu.memory_space<vmem>>, %arg5: memref<8x128xbf16, #tpu.memory_space<vmem>>, %arg6: memref<3x128xf32, #tpu.memory_space<vmem>>, %arg7: memref<1x128xf32, #tpu.memory_space<vmem>>, %arg8: memref<128x128xbf16, #tpu.memory_space<vmem>>, %arg9: memref<1x128xf32, #tpu.memory_space<vmem>>, %arg10: memref<32x128xbf16, #tpu.memory_space<vmem>>) attributes {dimension_semantics = [#tpu.dimension_semantics<parallel>], iteration_bounds = array<i64: 2>, scalar_prefetch = 0 : i64, scratch_operands = 0 : i64, tpu.core_type = #tpu.core_type<tc>, window_params = [{transform_indices = @transform_0, window_bounds = array<i64: 32, 16>}, {transform_indices = @transform_1, window_bounds = array<i64: 32, 1>}, {transform_indices = @transform_2, window_bounds = array<i64: 32, 3>}, {pipeline_mode = #tpu.pipeline_mode<synchronous>, transform_indices = @transform_3, window_bounds = array<i64: 16, 128>}, {pipeline_mode = #tpu.pipeline_mode<synchronous>, transform_indices = @transform_4, window_bounds = array<i64: 8, 128>}, {pipeline_mode = #tpu.pipeline_mode<synchronous>, transform_indices = @transform_5, window_bounds = array<i64: 3, 128>}, {pipeline_mode = #tpu.pipeline_mode<synchronous>, transform_indices = @transform_6, window_bounds = array<i64: 1, 128>}, {pipeline_mode = #tpu.pipeline_mode<synchronous>, transform_indices = @transform_7, window_bounds = array<i64: 128, 128>}, {pipeline_mode = #tpu.pipeline_mode<synchronous>, transform_indices = @transform_8, window_bounds = array<i64: 1, 128>}, {transform_indices = @transform_9, window_bounds = array<i64: 32, 128>}]} {
    %c0 = arith.constant 0 : index
    %c0_0 = arith.constant 0 : index
    %0 = vector.load %arg1[%c0, %c0_0] : memref<32x16xf32, #tpu.memory_space<vmem>>, vector<32x16xf32>
    %1 = arith.truncf %0 : vector<32x16xf32> to vector<32x16xbf16>
    %c0_1 = arith.constant 0 : index
    %c0_2 = arith.constant 0 : index
    %2 = vector.load %arg4[%c0_1, %c0_2] : memref<16x128xbf16, #tpu.memory_space<vmem>>, vector<16x128xbf16>
    %cst = arith.constant dense<0.000000e+00> : vector<32x128xf32>
    %3 = tpu.matmul %1, %2, %cst {dimension_numbers = #tpu.dot_dimension_numbers<[1], [0], [0], [1], [0, 0, 1, 1], [], []>} : vector<32x16xbf16>, vector<16x128xbf16>, vector<32x128xf32> -> vector<32x128xf32>
    %c0_3 = arith.constant 0 : index
    %c0_4 = arith.constant 0 : index
    %4 = vector.load %arg2[%c0_3, %c0_4] : memref<32x1xi32, #tpu.memory_space<vmem>>, vector<32x1xi32>
    %5 = tpu.iota {dimensions = array<i32: 1>} : vector<32x8xi32>
    %6 = vector.broadcast %4 : vector<32x1xi32> to vector<32x8xi32>
    %7 = arith.cmpi eq, %6, %5 : vector<32x8xi32>
    %8 = arith.extui %7 : vector<32x8xi1> to vector<32x8xi32>
    %9 = arith.sitofp %8 : vector<32x8xi32> to vector<32x8xf32>
    %10 = arith.truncf %9 : vector<32x8xf32> to vector<32x8xbf16>
    %c0_5 = arith.constant 0 : index
    %c0_6 = arith.constant 0 : index
    %11 = vector.load %arg5[%c0_5, %c0_6] : memref<8x128xbf16, #tpu.memory_space<vmem>>, vector<8x128xbf16>
    %cst_7 = arith.constant dense<0.000000e+00> : vector<32x128xf32>
    %12 = tpu.matmul %10, %11, %cst_7 {dimension_numbers = #tpu.dot_dimension_numbers<[1], [0], [0], [1], [0, 0, 1, 1], [], []>} : vector<32x8xbf16>, vector<8x128xbf16>, vector<32x128xf32> -> vector<32x128xf32>
    %13 = arith.addf %3, %12 : vector<32x128xf32>
    %c0_8 = arith.constant 0 : index
    %c0_9 = arith.constant 0 : index
    %14 = vector.load %arg3[%c0_8, %c0_9] : memref<32x3xf32, #tpu.memory_space<vmem>>, vector<32x3xf32>
    %c0_10 = arith.constant 0 : index
    %c0_11 = arith.constant 0 : index
    %15 = vector.load %arg6[%c0_10, %c0_11] : memref<3x128xf32, #tpu.memory_space<vmem>>, vector<3x128xf32>
    %16 = vector.extract_strided_slice %14 {offsets = [0, 0], sizes = [32, 1], strides = [1, 1]} : vector<32x3xf32> to vector<32x1xf32>
    %17 = vector.extract_strided_slice %15 {offsets = [0, 0], sizes = [1, 128], strides = [1, 1]} : vector<3x128xf32> to vector<1x128xf32>
    %18 = vector.broadcast %16 : vector<32x1xf32> to vector<32x128xf32>
    %19 = vector.broadcast %17 : vector<1x128xf32> to vector<32x128xf32>
    %20 = arith.mulf %18, %19 : vector<32x128xf32>
    %21 = arith.addf %13, %20 : vector<32x128xf32>
    %22 = vector.extract_strided_slice %14 {offsets = [0, 1], sizes = [32, 1], strides = [1, 1]} : vector<32x3xf32> to vector<32x1xf32>
    %23 = vector.extract_strided_slice %15 {offsets = [1, 0], sizes = [1, 128], strides = [1, 1]} : vector<3x128xf32> to vector<1x128xf32>
    %24 = vector.broadcast %22 : vector<32x1xf32> to vector<32x128xf32>
    %25 = vector.broadcast %23 : vector<1x128xf32> to vector<32x128xf32>
    %26 = arith.mulf %24, %25 : vector<32x128xf32>
    %27 = arith.addf %21, %26 : vector<32x128xf32>
    %28 = vector.extract_strided_slice %14 {offsets = [0, 2], sizes = [32, 1], strides = [1, 1]} : vector<32x3xf32> to vector<32x1xf32>
    %29 = vector.extract_strided_slice %15 {offsets = [2, 0], sizes = [1, 128], strides = [1, 1]} : vector<3x128xf32> to vector<1x128xf32>
    %30 = vector.broadcast %28 : vector<32x1xf32> to vector<32x128xf32>
    %31 = vector.broadcast %29 : vector<1x128xf32> to vector<32x128xf32>
    %32 = arith.mulf %30, %31 : vector<32x128xf32>
    %33 = arith.addf %27, %32 : vector<32x128xf32>
    %c0_12 = arith.constant 0 : index
    %c0_13 = arith.constant 0 : index
    %34 = vector.load %arg7[%c0_12, %c0_13] : memref<1x128xf32, #tpu.memory_space<vmem>>, vector<1x128xf32>
    %35 = vector.broadcast %34 : vector<1x128xf32> to vector<32x128xf32>
    %36 = arith.addf %33, %35 : vector<32x128xf32>
    %cst_14 = arith.constant 0.000000e+00 : f32
    %37 = vector.broadcast %cst_14 : f32 to vector<32x128xf32>
    %38 = arith.maximumf %36, %37 : vector<32x128xf32>
    %c0_15 = arith.constant 0 : index
    %c0_16 = arith.constant 0 : index
    %39 = vector.load %arg8[%c0_15, %c0_16] : memref<128x128xbf16, #tpu.memory_space<vmem>>, vector<128x128xbf16>
    %c0_17 = arith.constant 0 : index
    %c0_18 = arith.constant 0 : index
    %40 = vector.load %arg9[%c0_17, %c0_18] : memref<1x128xf32, #tpu.memory_space<vmem>>, vector<1x128xf32>
    %41 = arith.truncf %38 : vector<32x128xf32> to vector<32x128xbf16>
    %cst_19 = arith.constant dense<0.000000e+00> : vector<32x128xf32>
    %42 = tpu.matmul %41, %39, %cst_19 {dimension_numbers = #tpu.dot_dimension_numbers<[1], [0], [0], [1], [0, 0, 1, 1], [], []>} : vector<32x128xbf16>, vector<128x128xbf16>, vector<32x128xf32> -> vector<32x128xf32>
    %43 = vector.broadcast %40 : vector<1x128xf32> to vector<32x128xf32>
    %44 = arith.addf %42, %43 : vector<32x128xf32>
    %45 = arith.negf %44 : vector<32x128xf32>
    %46 = math.exp %45 : vector<32x128xf32>
    %cst_20 = arith.constant 1.000000e+00 : f32
    %47 = vector.broadcast %cst_20 : f32 to vector<32x128xf32>
    %48 = arith.addf %47, %46 : vector<32x128xf32>
    %49 = arith.divf %47, %48 : vector<32x128xf32>
    %50 = arith.truncf %49 : vector<32x128xf32> to vector<32x128xbf16>
    %c0_21 = arith.constant 0 : index
    %c0_22 = arith.constant 0 : index
    %51 = vector.load %arg10[%c0_21, %c0_22] : memref<32x128xbf16, #tpu.memory_space<vmem>>, vector<32x128xbf16>
    tpu.vector_store %arg10[%c0_21, %c0_22], %50 {strides = array<i32>} : memref<32x128xbf16, #tpu.memory_space<vmem>>, vector<32x128xbf16>,
    return
  }
  func.func @transform_0(%arg0: i32) -> (i32, i32) {
    %c0_i32 = arith.constant 0 : i32
    %c0_i32_0 = arith.constant 0 : i32
    return %arg0, %c0_i32 : i32, i32
  }
  func.func @transform_1(%arg0: i32) -> (i32, i32) {
    %c0_i32 = arith.constant 0 : i32
    %c0_i32_0 = arith.constant 0 : i32
    return %arg0, %c0_i32 : i32, i32
  }
  func.func @transform_2(%arg0: i32) -> (i32, i32) {
    %c0_i32 = arith.constant 0 : i32
    %c0_i32_0 = arith.constant 0 : i32
    return %arg0, %c0_i32 : i32, i32
  }
  func.func @transform_3(%arg0: i32) -> (i32, i32) {
    %c0_i32 = arith.constant 0 : i32
    %c0_i32_0 = arith.constant 0 : i32
    %c0_i32_1 = arith.constant 0 : i32
    return %c0_i32, %c0_i32_0 : i32, i32
  }
  func.func @transform_4(%arg0: i32) -> (i32, i32) {
    %c0_i32 = arith.constant 0 : i32
    %c0_i32_0 = arith.constant 0 : i32
    %c0_i32_1 = arith.constant 0 : i32
    return %c0_i32, %c0_i32_0 : i32, i32
  }
  func.func @transform_5(%arg0: i32) -> (i32, i32) {
    %c0_i32 = arith.constant 0 : i32
    %c0_i32_0 = arith.constant 0 : i32
    %c0_i32_1 = arith.constant 0 : i32
    return %c0_i32, %c0_i32_0 : i32, i32
  }
  func.func @transform_6(%arg0: i32) -> (i32, i32) {
    %c0_i32 = arith.constant 0 : i32
    %c0_i32_0 = arith.constant 0 : i32
    %c0_i32_1 = arith.constant 0 : i32
    return %c0_i32, %c0_i32_0 : i32, i32
  }
  func.func @transform_7(%arg0: i32) -> (i32, i32) {
    %c0_i32 = arith.constant 0 : i32
    %c0_i32_0 = arith.constant 0 : i32
    %c0_i32_1 = arith.constant 0 : i32
    return %c0_i32, %c0_i32_0 : i32, i32
  }
  func.func @transform_8(%arg0: i32) -> (i32, i32) {
    %c0_i32 = arith.constant 0 : i32
    %c0_i32_0 = arith.constant 0 : i32
    %c0_i32_1 = arith.constant 0 : i32
    return %c0_i32, %c0_i32_0 : i32, i32
  }
  func.func @transform_9(%arg0: i32) -> (i32, i32) {
    %c0_i32 = arith.constant 0 : i32
    %c0_i32_0 = arith.constant 0 : i32
    return %arg0, %c0_i32 : i32, i32
  }
}

</mosaic_0001>

<bundles_post_ra>
// kernel: tpu_custom_call.1
= control target key start
LH: loop header
LB: loop body
LE: loop exit
PB: predicated region body
PF: predicated region fallthrough
CT: control target
= control target key end

     0   :  { %14 = vsyncpa [#allocation3], 0  ;;  %s1370_s0 = inlined_call_operand.vmem [shape: f32[64,16], index: 0, kind: input, shape index: {}]   ;;  %s1371_s1 = inlined_call_operand.vmem [shape: s32[64,1], index: 1, kind: input, shape index: {}]   ;;  %s1372_s2 = inlined_call_operand.vmem [shape: f32[64,3], index: 2, kind: input, shape index: {}]   ;;  %s1373_s3 = inlined_call_operand.vmem [shape: bf16[16,128], index: 3, kind: input, shape index: {}]   ;;  %s1374_s4 = inlined_call_operand.vmem [shape: bf16[8,128], index: 4, kind: input, shape index: {}]   ;;  %s1375_s5 = inlined_call_operand.vmem [shape: f32[3,128], index: 5, kind: input, shape index: {}]   ;;  %s1376_s6 = inlined_call_operand.vmem [shape: f32[1,128], index: 6, kind: input, shape index: {}]   ;;  %s1377_s7 = inlined_call_operand.vmem [shape: bf16[128,128], index: 7, kind: input, shape index: {}]   ;;  %s1378_s8 = inlined_call_operand.vmem [shape: f32[1,128], index: 8, kind: input, shape index: {}]   ;;  %s1379_s9 = inlined_call_operand.hbm [shape: bf16[64,128], index: 9, kind: output, shape index: {}]  }
   0x1   :  { %16 = vsyncpa [#allocation3 + $0x1], 0  ;;  %s1219_s30 = smov 0   ;;  %s1221_s10 = smov 0  }
   0x2   :  { %s1223_s11 = smov 0   ;;  %s1225_s12 = smov 0  }
   0x3 LB: > { %s1240_s13 = sadd.s32 4294967295, %s1160_s12   ;;  %s916_s14 = sadd.s32 4294967294, %s1160_s12   ;;  %s1160_s12 = sphi %s1225_s12, %s1385_s12   ;;  %s1156_s11 = sphi %s1223_s11, %s1384_s11   ;;  %s1152_s10 = sphi %s1221_s10, %s1383_s10   ;;  %s1148_s30 = sphi %s1219_s30, %s1382_s30  }
   0x4   : > { %s1244_s15 = sadd.s32 1, %s1160_s12   ;;  %s233_s16 = sadd.s32 1, %s1156_s11 }
   0x5   : > { %s230_s17 = ssub.s32 %s1160_s12, %s1244_s15  ;;  %p243_p0 = scmp.ne.s32.totalorder %s1156_s11, %s1152_s10 }
   0x6   : > { %p231_p1 = scmp.eq.s32.totalorder %s230_s17, 0  ;;  %p244_p2 = scmp.eq.s32.totalorder %s1240_s13, 1 }
   0x7   : > { %p249_p3 = scmp.ne.s32.totalorder %s1152_s10, %s1148_s30  ;;  %p250_p4 = scmp.eq.s32.totalorder %s916_s14, 1 }
   0x8   : > { %s1255_s18 = scalar_select %p231_p1, %s1156_s11, %s233_s16  }
   0x9   : > { %p1257_p5 = por %p244_p2, %p243_p0  ;;  %p1261_p6 = por %p250_p4, %p249_p3 }
   0xa   : > { %p919_p7 = scmp.ge.s32.totalorder %s1160_s12, 1  ;;  %p313_p8 = scmp.lt.s32.totalorder %s1160_s12, 3 }
   0xc   : > { %p314_p9 = pnand %p919_p7, %p313_p8 }
   0xd   : > { %s921_s21 = sshll.u32 (!%p314_p9), %s1240_s13, 2  ;;  %s356_s23 = sand.u32 (!%p314_p9), 1, %s1152_s10  }
   0xe   : > { %317 = sbr.rel (%p314_p9) target bundleno = 627 (0x273), region = 56  ;;  %p360_p10 = scmp.lt.s32.totalorder (!%p314_p9), %s921_s21, 7 }
   0xf   : > { %s920_s24 = sshll.u32 (!%p314_p9), %s356_s23, 4  ;;  %s1166_s16 = smov (!%p314_p9), [#allocation2]  }
  0x10   : > { %s1104_s17 = sshll.u32 (!%p314_p9), %s1166_s16, 4  ;;  %s1105_s17 = int_to_ptr.vmem [resolvable:$false] %s1104_s17 }
  0x13   : > { %v1162_v0 = vmov 0   ;;  %s1387_s21 = smov (!%p360_p10, %s921_s21), 7  ;;  %vm427_vm0 = vcmask 1043456   ;;  %v419_v5 = vld [vmem:[%s1374_s4] sm:$0xf]  ;;  %v1076_v12 = vld [vmem:[%s1377_s7 + $0x38] sm:$0xff]   ;;  %v391_v15 = vlaneseq }
  0x14   : > { %1070 = vset.pattern.permute.xlu1 %v1162_v0  ;;  %1069 = vset.pattern.permute.xlu0 %v1162_v0  ;;  %s1268_s22 = sshll.u32 %s1387_s21, 3  ;;  %v429_v6 = vsel %vm427_vm0, %v419_v5, 0  ;;  %v1075_v7 = vld [vmem:[%s1373_s3] sm:$0xff]   ;;  %v1163_v13 = vmov 1   ;;  %v1164_v14 = vmov 2   ;;  %vm420_vm5 = vcmask 64512  }
  0x15   : > { %s369_s25 = scalar_lea.vmem %s1371_s1, %s1268_s22  ;;  %s375_s14 = scalar_lea.vmem %s1372_s2, %s1268_s22  ;;  %1023 = vmatprep.subr.msk.bf16.mxu1 %vm427_vm0, %v419_v5  ;;  %1003 = vmatprep.subr.bf16.mxu0 %v1076_v12  ;;  %v392_v16 = vand.u32 127, %v391_v15  ;;  %v1165_v23 = vmov 0.0   ;;  %vm486_vm6 = vcmask 130048   ;;  %v1077_v34 = vld [vmem:[%s1377_s7 + $0x30] sm:$0xff]   ;;  %v1078_v35 = vld [vmem:[%s1377_s7 + $0x28] sm:$0xff]   ;;  %v1079_v36 = vld [vmem:[%s1377_s7 + $0x20] sm:$0xff]  }
  0x16   : > { %v389_v1 = vld [vmem:[%s369_s25 + $0x10] sm:$0xff]  ;;  %v387_v2 = vld [vmem:[%s369_s25] sm:$0xff]  ;;  %v390_v3 = vld [vmem:[%s369_s25 + $0x18] sm:$0xff]  ;;  %992 = vmatpush3.bf16.msra.mxu1 %v429_v6  ;;  %1004 = vmatpush3.bf16.msra.mxu0 %v1076_v12  ;;  %s363_s26 = scalar_lea.vmem %s1370_s0, %s1268_s22  ;;  %v568_v46 = vshrl.u32 %v391_v15, 7  ;;  %s1106_s21 = scalar_lea.vmem %s1105_s17, 512 }
  0x17   : > { %400 = vperm.xlu1 %1070, %v389_v1   ;;  %394 = vperm.xlu0 %1069, %v387_v2   ;;  %v388_v4 = vld [vmem:[%s369_s25 + $0x8] sm:$0xff]  ;;  %v542_v9 = vld [vmem:[%s375_s14] sm:$0xff]  ;;  %v545_v10 = vld [vmem:[%s375_s14 + $0x18] sm:$0xff]  ;;  %s963_s25 = sshll.u32 %s1240_s13, 8  ;;  %s1330_s13 = scalar_lea.sflag [#allocation3], %s356_s23 }
  0x18   : > { %v543_v8 = vld [vmem:[%s375_s14 + $0x8] sm:$0xff]  ;;  %997 = vmatprep.subr.bf16.mxu1 %v1075_v7  ;;  %v544_v11 = vld [vmem:[%s375_s14 + $0x10] sm:$0xff]  ;;  %v379_v21 = vld [vmem:[%s363_s26] sm:$0xff]  ;;  %1005 = vmatprep.subr.bf16.mxu0 %v1077_v34  ;;  %v569_v51 = vsub.s32 0, %v568_v46  ;;  %v597_v53 = vsub.s32 1, %v568_v46  ;;  %v625_v56 = vsub.s32 2, %v568_v46  ;;  %s1326_s29 = scalar_lea.hbm %s1379_s9, %s963_s25 }
  0x19   : > { %v380_v22 = vld [vmem:[%s363_s26 + $0x8] sm:$0xff]  ;;  %v381_v31 = vld [vmem:[%s363_s26 + $0x10] sm:$0xff]  ;;  %v382_v32 = vld [vmem:[%s363_s26 + $0x18] sm:$0xff]  ;;  %s358_s26 = scalar_lea.vmem [#allocation2], %s920_s24 }
  0x1a   : > { %v383_v30 = vpack.c.bf16 %v380_v22, %v379_v21  ;;  %v384_v33 = vpack.c.bf16 %v382_v32, %v381_v31  ;;  %1006 = vmatpush3.bf16.msra.mxu0 %v1077_v34  ;;  %v1080_v37 = vld [vmem:[%s1377_s7 + $0x18] sm:$0xff]   ;;  %v1081_v38 = vld [vmem:[%s1377_s7 + $0x10] sm:$0xff]   ;;  %v1082_v39 = vld [vmem:[%s1377_s7 + $0x8] sm:$0xff]   ;;  %s830_s22 = sshll.u32 %s358_s26, 4  ;;  %s1328_s22 = int_to_ptr.vmem [resolvable:$true] %s830_s22 }
  0x1b   : > { %403 = vperm.xlu1 %1070, %v390_v3   ;;  %397 = vperm.xlu0 %1069, %v388_v4   ;;  %v1083_v40 = vld [vmem:[%s1377_s7] sm:$0xff]   ;;  %s1100_s14 = scalar_lea.vmem %s1328_s22, 256  ;;  %p1107_p0 = scmp.lt.s32.totalorder %s1328_s22, %s1105_s17 }
  0x1c   : > { %1007 = vmatprep.subr.bf16.mxu0 %v1078_v35  ;;  %v546_v52 = vld [vmem:[%s1375_s5] sm:$0x7]  ;;  %p1101_p11 = scmp.ne.s32.totalorder %s1328_s22, %s1100_s14  ;;  %p1108_p1 = scmp.lt.s32.totalorder %s1106_s21, %s1100_s14 }
  0x1d   : > { %v570_v58 = vrot.slane %v546_v52, %v569_v51  ;;  %v598_v60 = vrot.slane %v546_v52, %v597_v53  ;;  %v626_v0 = vrot.slane %v546_v52, %v625_v56  ;;  %v936_v32 = vld [vmem:[%s1376_s6] ss:$0 sm:$0xff] }
  0x1e   : > { %1008 = vmatpush3.bf16.msra.mxu0 %v1078_v35  ;;  %p1102_p12 = pnand %p1101_p11, %p1257_p5  ;;  %p1109_p2 = por %p1108_p1, %p1107_p0 }
  0x1f   : > { %554 = vperm.xlu1 %1070, %v543_v8   ;;  %549 = vperm.xlu0 %1069, %v542_v9  }
  0x20   : > { %1009 = vmatprep.subr.bf16.mxu0 %v1079_v36  ;;  %p1103_p13 = pneg %p1102_p12 }
  0x22   : > { %1010 = vmatpush3.bf16.msra.mxu0 %v1079_v36  ;;  %p1110_p3 = pnand %p1109_p2, %p1103_p13 }
  0x23   : > { %564 = vperm.xlu1 %1070, %v545_v10   ;;  %559 = vperm.xlu0 %1069, %v544_v11  }
  0x24   : > { %1011 = vmatprep.subr.bf16.mxu0 %v1080_v37 }
  0x26   : > { %1012 = vmatpush3.bf16.msra.mxu0 %v1080_v37 }
  0x27   : > { %1072 = vset.pattern.permute.xlu1 %v1163_v13  ;;  %1071 = vset.pattern.permute.xlu0 %v1163_v13 }
  0x28   : > { %584 = vperm.xlu1 %1072, %v543_v8   ;;  %580 = vperm.xlu0 %1071, %v542_v9  }
  0x29   : > { %1013 = vmatprep.subr.bf16.mxu0 %v1081_v38 }
  0x2a   : > { %1014 = vmatpush3.bf16.msra.mxu0 %v1081_v38 }
  0x2b   : > { %1015 = vmatprep.subr.bf16.mxu0 %v1082_v39 }
  0x2c   : > { %588 = vperm.xlu1 %1072, %v544_v11   ;;  %592 = vperm.xlu0 %1071, %v545_v10  }
  0x2e   : > { %1016 = vmatpush3.bf16.msra.mxu0 %v1082_v39 }
  0x2f   : > { %1017 = vmatprep.subr.bf16.mxu0 %v1083_v40 }
  0x30   : > { %1073 = vset.pattern.permute.xlu1 %v1164_v14  ;;  %1074 = vset.pattern.permute.xlu0 %v1164_v14 }
  0x31   : > { %608 = vperm.xlu1 %1073, %v542_v9   ;;  %612 = vperm.xlu0 %1074, %v543_v8  }
  0x32   : > { %1018 = vmatpush3.bf16.msra.mxu0 %v1083_v40 }
  0x35   : > { %616 = vperm.xlu1 %1073, %v544_v11  }
  0x39   : > { %620 = vperm.xlu1 %1073, %v545_v10  }
  0x92   : > { %v401_v17 = vpop.permute.xlu1 %400  ;;  %v395_v18 = vpop.permute.xlu0 %394 }
  0x93   : > { %vm407_vm1 = vcmp.eq.s32.totalorder %v401_v17, %v392_v16  ;;  %vm405_vm2 = vcmp.eq.s32.totalorder %v395_v18, %v392_v16 }
  0x94   : > { %v929_v24 = vsel %vm407_vm1, 1.0, %v1165_v23  ;;  %v927_v25 = vsel %vm405_vm2, 1.0, %v1165_v23 }
  0x96   : > { %v404_v19 = vpop.permute.xlu1 %403  ;;  %v398_v20 = vpop.permute.xlu0 %397 }
  0x97   : > { %vm408_vm3 = vcmp.eq.s32.totalorder %v404_v19, %v392_v16  ;;  %vm406_vm4 = vcmp.eq.s32.totalorder %v398_v20, %v392_v16 }
  0x98   : > { %v930_v26 = vsel %vm408_vm3, 1.0, %v1165_v23  ;;  %v928_v27 = vsel %vm406_vm4, 1.0, %v1165_v23 }
  0x99   : > { %v418_v28 = vpack.c.bf16 %v930_v26, %v929_v24  ;;  %v417_v29 = vpack.c.bf16 %v928_v27, %v927_v25 }
  0x9a   : > { %v555_v41 = vpop.permute.xlu1 %554  ;;  %v550_v44 = vpop.permute.xlu0 %549 }
  0x9b   : > { %993 = vmatprep.mubr.msk.bf16.mxu1 %vm420_vm5, %v417_v29  ;;  %v571_v3 = vmul.f32 %v570_v58, %v550_v44  ;;  %v572_v13 = vmul.f32 %v570_v58, %v555_v41  ;;  %v937_v44 = vld [vmem:[%s1378_s8] ss:$0 sm:$0xff] }
  0x9c   : > { %994 = vmatmul.mubr.msk.bf16.vlgmr.msra.gmra.mxu1 %vm420_vm5, %v418_v28 }
  0x9d   : > { %998 = vmatpush3.bf16.msra.mxu1 %v1075_v7  ;;  %999 = vmatprep.mubr.msk.bf16.mxu1 %vm486_vm6, %v383_v30 }
  0x9e   : > { %v565_v42 = vpop.permute.xlu1 %564  ;;  %v560_v47 = vpop.permute.xlu0 %559 }
  0x9f   : > { %v573_v62 = vmul.f32 %v570_v58, %v560_v47  ;;  %v574_v8 = vmul.f32 %v570_v58, %v565_v42 }
  0xa3   : > { %v585_v43 = vpop.permute.xlu1 %584  ;;  %v581_v55 = vpop.permute.xlu0 %580 }
  0xa4   : > { %1000 = vmatmul.mubr.msk.bf16.vlgmr.msra.gmra.mxu1 %vm486_vm6, %v384_v33  ;;  %v599_v9 = vmul.f32 %v598_v60, %v581_v55  ;;  %v600_v23 = vmul.f32 %v598_v60, %v585_v43 }
  0xa7   : > { %v589_v45 = vpop.permute.xlu1 %588  ;;  %v593_v1 = vpop.permute.xlu0 %592 }
  0xa8   : > { %v601_v6 = vmul.f32 %v598_v60, %v589_v45  ;;  %v602_v19 = vmul.f32 %v598_v60, %v593_v1 }
  0xac   : > { %v609_v49 = vpop.permute.xlu1 %608  ;;  %v613_v18 = vpop.permute.xlu0 %612 }
  0xad   : > { %v627_v14 = vmul.f32 %v626_v0, %v609_v49  ;;  %v628_v27 = vmul.f32 %v626_v0, %v613_v18 }
  0xb0   : > { %v617_v59 = vpop.permute.xlu1 %616 }
  0xb1   : > { %v629_v15 = vmul.f32 %v626_v0, %v617_v59 }
  0xb4   : > { %v621_v11 = vpop.permute.xlu1 %620 }
  0xb5   : > { %v630_v24 = vmul.f32 %v626_v0, %v621_v11 }
 0x15c   : > { %v995_v48 = vpop.f32.mrf.mxu1 }
 0x15e   : > { %v465_v50 = vpop.f32.mrf.mxu1 }
 0x160   : > { %v996_v54 = vpop.f32.mrf.mxu1 }
 0x162   : > { %v468_v57 = vpop.f32.mrf.mxu1 }
 0x164   : > { %v1001_v61 = vpop.f32.mrf.mxu1 }
 0x165   : > { %v536_v63 = vadd.f32 %v1001_v61, %v995_v48 }
 0x166   : > { %v527_v2 = vpop.f32.mrf.mxu1 }
 0x167   : > { %v577_v4 = vadd.f32 %v573_v62, %v536_v63  ;;  %v528_v5 = vadd.f32 %v527_v2, %v465_v50 }
 0x168   : > { %v1002_v7 = vpop.f32.mrf.mxu1 }
 0x169   : > { %v575_v10 = vadd.f32 %v571_v3, %v528_v5  ;;  %v539_v12 = vadd.f32 %v1002_v7, %v996_v54  ;;  %v605_v16 = vadd.f32 %v601_v6, %v577_v4 }
 0x16a   : > { %v530_v17 = vpop.f32.mrf.mxu1 }
 0x16b   : > { %v603_v20 = vadd.f32 %v599_v9, %v575_v10  ;;  %v578_v21 = vadd.f32 %v574_v8, %v539_v12  ;;  %v531_v22 = vadd.f32 %v530_v17, %v468_v57  ;;  %v633_v29 = vadd.f32 %v629_v15, %v605_v16 }
 0x16d   : > { %v606_v25 = vadd.f32 %v602_v19, %v578_v21  ;;  %v576_v26 = vadd.f32 %v572_v13, %v531_v22  ;;  %v631_v28 = vadd.f32 %v627_v14, %v603_v20  ;;  %v644_v36 = vadd.f32 %v936_v32, %v633_v29 }
 0x16f   : > { %v634_v30 = vadd.f32 %v630_v24, %v606_v25  ;;  %v604_v31 = vadd.f32 %v600_v23, %v576_v26  ;;  %v642_v34 = vadd.f32 %v936_v32, %v631_v28  ;;  %v648_v41 = vmax.f32 %v644_v36, 0.0 }
 0x171   : > { %v632_v33 = vadd.f32 %v628_v27, %v604_v31  ;;  %v645_v35 = vadd.f32 %v936_v32, %v634_v30  ;;  %v646_v39 = vmax.f32 %v642_v34, 0.0 }
 0x173   : > { %v643_v37 = vadd.f32 %v936_v32, %v632_v33  ;;  %v649_v38 = vmax.f32 %v645_v35, 0.0 }
 0x175   : > { %v647_v40 = vmax.f32 %v643_v37, 0.0  ;;  %v668_v43 = vpack.c.bf16 %v649_v38, %v648_v41 }
 0x177   : > { %v667_v42 = vpack.c.bf16 %v647_v40, %v646_v39 }
 0x179   : > { %1019 = vmatprep.mubr.bf16.mxu0 %v667_v42 }
 0x17a   : > { %1020 = vmatmul.mubr.bf16.vlgmr.msra.gmra.mxu0 %v668_v43 }
 0x23a   : > { %v1021_v45 = vpop.f32.mrf.mxu0 }
 0x23b   : > { %v766_v46 = vadd.f32 %v1021_v45, %v937_v44 }
 0x23c   : > { %v757_v47 = vpop.f32.mrf.mxu0 }
 0x23d   : > { %v948_v48 = vmul.f32 -1.442695, %v766_v46  ;;  %v758_v49 = vadd.f32 %v937_v44, %v757_v47 }
 0x23e   : > { %v1022_v50 = vpop.f32.mrf.mxu0 }
 0x23f   : > { %1084 = vpow2.f32 %v948_v48  ;;  %v946_v51 = vmul.f32 -1.442695, %v758_v49  ;;  %v769_v52 = vadd.f32 %v1022_v50, %v937_v44 }
 0x240   : > { %v760_v53 = vpop.f32.mrf.mxu0 }
 0x241   : > { %1086 = vpow2.f32 %v946_v51  ;;  %v949_v54 = vmul.f32 -1.442695, %v769_v52  ;;  %v761_v55 = vadd.f32 %v937_v44, %v760_v53 }
 0x243   : > { %1088 = vpow2.f32 %v949_v54  ;;  %v947_v56 = vmul.f32 -1.442695, %v761_v55 }
 0x245   : > { %1090 = vpow2.f32 %v947_v56 }
 0x24c   : > { %v1085_v57 = vpop.eup %1084 }
 0x24d   : > { %v786_v59 = vadd.f32 1.0, %v1085_v57 }
 0x24e   : > { %v1087_v58 = vpop.eup %1086 }
 0x24f   : > { %v784_v61 = vadd.f32 1.0, %v1087_v58  ;;  %1092 = vrcp.f32 %v786_v59 }
 0x250   : > { %v1089_v60 = vpop.eup %1088 }
 0x251   : > { %v787_v62 = vadd.f32 1.0, %v1089_v60 }
 0x252   : > { %v1091_v63 = vpop.eup %1090 }
 0x253   : > { %1094 = vrcp.f32 %v787_v62  ;;  %v785_v0 = vadd.f32 1.0, %v1091_v63 }
 0x254   : > { %1096 = vrcp.f32 %v784_v61 }
 0x255   : > { %1098 = vrcp.f32 %v785_v0 }
 0x25c   : > { %v1093_v1 = vpop.eup %1092 }
 0x260   : > { %v1095_v2 = vpop.eup %1094 }
 0x261   : > { %v1097_v3 = vpop.eup %1096  ;;  %v972_v4 = vpack.c.bf16 %v1095_v2, %v1093_v1 }
 0x262   : > { %v1099_v5 = vpop.eup %1098 }
 0x263   : > { %v967_v6 = vpack.c.bf16 %v1099_v5, %v1097_v3  ;;  %974 = vst [vmem:[%s358_s26 + $0x8] sm:$0xff] %v972_v4  }
 0x265   : > { %968 = vst [vmem:[%s358_s26] sm:$0xff] %v967_v6  }
 0x266   : > { %1113 = shalt.err (!%p1110_p3)
}
 0x267   : > { %s1114_s23 = scalar_lea.hbm %s1326_s29, 256  ;;  %s1118_s26 = scalar_lea.hbm %s1379_s9, 512 }
 0x268   : > { %p1115_p4 = scmp.ne.s32.totalorder %s1326_s29, %s1114_s23  ;;  %p1119_p9 = scmp.lt.s32.totalorder %s1326_s29, %s1379_s9 }
 0x269   : > { %p1120_p10 = scmp.lt.s32.totalorder %s1118_s26, %s1114_s23 }
 0x26a   : > { %p1116_p7 = pnand %p1115_p4, %p1257_p5 }
 0x26b   : > { %p1121_p11 = por %p1120_p10, %p1119_p9 }
 0x26c   : > { %p1117_p8 = pneg %p1116_p7 }
 0x26e   : > { %p1122_p12 = pnand %p1121_p11, %p1117_p8 }
 0x270   : > { %1125 = shalt.err (!%p1122_p12)
}
 0x271   : > { %s1167_s14 = smov 64   ;;  %s1168_s16 = smov 4  }
 0x272   : > { %1024 = dma.vmem_to_hbm [thread:$0]  (%p1257_p5), %s1328_s22, 256, %s1326_s29, %s1330_s13, %s1167_s14, %s1167_s14, %s1168_s16  }
 0x273 PF: > { %p1030_p13 = scmp.ge.s32.totalorder %s1160_s12, 2  ;;  %s845_s17 = sand.u32 1, %s1148_s30  }
 0x274   : > { %s846_s21 = scalar_lea.sflag [#allocation3], %s845_s17 }
 0x275   : > { %p1027_p0 = pnand %p1030_p13, %p1261_p6 }
 0x277   : > { %p1028_p1 = pneg %p1027_p0 }
 0x279   : > { %1143 = dma.done.wait (%p1028_p1), %s846_s21, 256  }
 0x27a   : > { %1145 = vsyncadd (%p1028_p1), %s846_s21, 4294967040  ;;  %p19_p2 = scmp.ge.s32.totalorder %s1244_s15, 4   ;;  %s1382_s30 = smov %s1152_s10 }
 0x27b   : > { %s1383_s10 = smov %s1156_s11  ;;  %s1384_s11 = smov %s1255_s18 }
 0x27c   : > { %s1385_s12 = smov %s1244_s15  ;;  %21 = sbr.rel (!%p19_p2) target bundleno = 3 (0x3), region = 97 }
 0x281   :  { %851 = vsyncpa [#allocation3], 1 }
 0x282   :  { %853 = vsyncpa [#allocation3 + $0x1], 1 }

</bundles_post_ra>
